<compile_context>
chip_gen: v7x
topology: tpu7x:2x2x1
jax: 0.10.0
libtpu: 0.0.40
codegen_flags: <defaults>
</compile_context>

<pallas_src>
from functools import partial

import jax
import jax.numpy as jnp
from jax import lax
from jax.experimental import pallas as pl
from jax.experimental.pallas import tpu as pltpu


def vq_kernel(x_ref, em2_ref, et_ref, esq_ref, q_ref, sse_ref):
    """Quantize one (1, D, TS) channel-major latent tile.

    x_ref:   (1, D, TS)      latent tile (channels x spatial), VMEM
    em2_ref: (K, D)          -2 * codebook (resident, same block every step)
    et_ref:  (D, K)          codebook transposed (resident)
    esq_ref: (K, 1)          per-code squared norms (resident)
    q_ref:   (1, D, TS)      quantized tile
    sse_ref: (1, 1, 8, 128)  per-tile SSE partial (scalar broadcast to a vreg)
    """
    x_t = x_ref[0, :, :].astype(jnp.float32)             # (D, TS)
    em2 = em2_ref[...]                                    # (K, D)  == -2 * E
    e_t = et_ref[...]                                     # (D, K)
    e_sq = esq_ref[...]                                   # (K, 1)
    K = em2.shape[0]
    TS = x_t.shape[1]

    # score[k, s] = ||e_k||^2 - 2 <e_k, x_s>.
    # argmin over k is identical to the true squared distance (the per-column
    # ||x_s||^2 shift is constant over k); the -2 is folded into the resident
    # MXU operand, so there is no per-step elementwise scaling at all.
    score = jnp.dot(em2, x_t, preferred_element_type=jnp.float32) + e_sq   # (K, TS)

    # argmin over the codebook (sublane axis) with first-index tie-break
    # (matches torch.argmin), expressed as min-reductions + compares.
    min_s = jnp.min(score, axis=0, keepdims=True)                          # (1, TS)
    row = lax.broadcasted_iota(jnp.int32, (K, TS), 0).astype(jnp.float32)  # (K, TS)
    first = jnp.min(jnp.where(score == min_s, row, jnp.float32(K)),
                    axis=0, keepdims=True)                                 # (1, TS)
    one_hot_t = (row == first).astype(jnp.float32)                         # (K, TS)

    # Quantized tile: q^T = E^T @ one_hot^T  (exact codebook rows, f32 acc).
    q_t = jnp.dot(e_t, one_hot_t, preferred_element_type=jnp.float32)      # (D, TS)
    q_ref[0, :, :] = q_t.astype(q_ref.dtype)

    # Per-tile sum of squared error for the MSE-based VQ loss, written to a
    # disjoint lane-dense block (keeps every grid axis fully parallel).
    diff = q_t - x_t
    part = jnp.sum(diff * diff)
    sse_ref[0, 0, :, :] = part + jnp.zeros((8, 128), jnp.float32)


def _choose_spatial_tile(hw, max_tile=1024):
    """Largest lane tile <= max_tile that divides hw (multiple of 128 if tiled)."""
    if hw <= max_tile:
        return hw
    t = (max_tile // 128) * 128
    while t >= 128:
        if hw % t == 0:
            return t
        t -= 128
    return hw   # no 128-multiple divisor: take whole spatial rows (still correct)


def vector_quantize(latents_nchw, embedding, *, beta=0.25, max_spatial_tile=1024):
    """Forward pass of VectorQuantizer.

    latents_nchw: [B, D, H, W] float32 (PyTorch NCHW convention)
    embedding:    [K, D] codebook
    returns (quantized_nchw, vq_loss)
    """
    B, D, H, W = latents_nchw.shape
    K, D2 = embedding.shape
    assert D == D2, "channel dim must equal embedding_dim"
    HW = H * W

    lat = latents_nchw.reshape(B, D, HW)        # channel-major view; no transpose
    tile_s = _choose_spatial_tile(HW, max_spatial_tile)
    n_tiles = HW // tile_s

    # Codebook-side precomputation (tiny, done once; resident in VMEM).
    emb = embedding.astype(jnp.float32)
    e_m2 = -2.0 * emb                                    # (K, D)
    e_t = emb.T                                          # (D, K)
    e_sq = jnp.sum(emb * emb, axis=1, keepdims=True)     # (K, 1)

    # Explicit VMEM budget: double-buffered tiles + resident codebook + slack.
    f32 = 4
    est = (2 * 2 * D * tile_s * f32            # x + q tiles, double-buffered
           + 2 * 2 * K * D * f32               # -2E and E^T (double-buffered)
           + 2 * K * 128 * f32                 # ||e||^2 padded to lane width
           + 4 * K * tile_s * f32              # score / one-hot intermediates
           + 2 * 8 * 128 * f32)                # SSE partial block
    vmem_limit = int(min(64 * 2 ** 20, max(32 * 2 ** 20, 2 * est)))
    # TODO(synk): single-buffer the resident codebook blocks (pipeline_mode=
    # pl.Buffered(1)) to halve their VMEM footprint on very large-K codebooks.

    q, sse = pl.pallas_call(
        vq_kernel,
        out_shape=(
            jax.ShapeDtypeStruct((B, D, HW), latents_nchw.dtype),
            jax.ShapeDtypeStruct((B, n_tiles, 8, 128), jnp.float32),
        ),
        grid_spec=pltpu.PrefetchScalarGridSpec(
            num_scalar_prefetch=0,
            grid=(B, n_tiles),
            in_specs=[
                pl.BlockSpec((1, D, tile_s), lambda b, t: (b, 0, t)),  # latent tile
                pl.BlockSpec((K, D), lambda b, t: (0, 0)),             # -2 * E
                pl.BlockSpec((D, K), lambda b, t: (0, 0)),             # E^T
                pl.BlockSpec((K, 1), lambda b, t: (0, 0)),             # ||e||^2
            ],
            out_specs=(
                pl.BlockSpec((1, D, tile_s), lambda b, t: (b, 0, t)),      # quantized
                pl.BlockSpec((1, 1, 8, 128), lambda b, t: (b, t, 0, 0)),   # SSE partial
            ),
        ),
        compiler_params=pltpu.CompilerParams(
            dimension_semantics=("parallel", "parallel"),
            vmem_limit_bytes=vmem_limit,
        ),
    )(lat, e_m2, e_t, e_sq)

    sse_total = jnp.sum(sse[:, :, 0, 0])
    mse = sse_total / jnp.float32(B * HW * D)
    # commitment_loss and embedding_loss have identical forward values
    # (detach only changes gradients), so vq_loss = (beta + 1) * mse.
    vq_loss = beta * mse + mse
    # TODO(synk): forward-only; training would need jax.custom_vjp to implement
    # the straight-through estimator / detach() gradient semantics.
    return q.reshape(B, D, H, W), vq_loss


def _reference(latents_nchw, embedding, beta=0.25):
    """Pure-JAX reference mirroring the PyTorch forward (for a sanity check)."""
    B, D, H, W = latents_nchw.shape
    lat = jnp.transpose(latents_nchw, (0, 2, 3, 1)).reshape(-1, D)
    dist = (jnp.sum(lat ** 2, axis=1, keepdims=True)
            + jnp.sum(embedding ** 2, axis=1)
            - 2.0 * lat @ embedding.T)
    inds = jnp.argmin(dist, axis=1)
    q = embedding[inds]
    mse = jnp.mean((q - lat) ** 2)
    vq_loss = beta * mse + mse
    q_nchw = jnp.transpose(q.reshape(B, H, W, D), (0, 3, 1, 2))
    return q_nchw, vq_loss


if __name__ == "__main__":
    key = jax.random.PRNGKey(0)
    k_lat, k_emb = jax.random.split(key)

    # Small shapes consistent with the module: num_embeddings=K, embedding_dim=D.
    B, D, H, W = 2, 16, 8, 8
    K = 32
    beta = 0.25

    latents = jax.random.normal(k_lat, (B, D, H, W), dtype=jnp.float32)
    # nn.Embedding(K, D).weight.data.uniform_(-1/K, 1/K)
    embedding = jax.random.uniform(
        k_emb, (K, D), minval=-1.0 / K, maxval=1.0 / K, dtype=jnp.float32)

    q, loss = jax.jit(partial(vector_quantize, beta=beta))(latents, embedding)
    jax.block_until_ready((q, loss))

    q_ref, loss_ref = _reference(latents, embedding, beta)
    assert q.shape == (B, D, H, W)
    assert jnp.allclose(q, q_ref, atol=1e-5, rtol=1e-5)
    assert jnp.allclose(loss, loss_ref, atol=1e-5, rtol=1e-5)

    print("KERNEL_OK")
</pallas_src>

<mosaic_0001>
module attributes {stable_mosaic.version = 11 : i64} {
  func.func @vq_kernel(%arg0: i32, %arg1: i32, %arg2: memref<1x16x64xf32, #tpu.memory_space<vmem>>, %arg3: memref<32x16xf32, #tpu.memory_space<vmem>>, %arg4: memref<16x32xf32, #tpu.memory_space<vmem>>, %arg5: memref<32x1xf32, #tpu.memory_space<vmem>>, %arg6: memref<1x16x64xf32, #tpu.memory_space<vmem>>, %arg7: memref<1x1x8x128xf32, #tpu.memory_space<vmem>>) attributes {dimension_semantics = [#tpu.dimension_semantics<parallel>, #tpu.dimension_semantics<parallel>], iteration_bounds = array<i64: 2, 1>, scalar_prefetch = 0 : i64, scratch_operands = 0 : i64, tpu.core_type = #tpu.core_type<tc>, window_params = [{transform_indices = @transform_0, window_bounds = array<i64: 1, 16, 64>}, {pipeline_mode = #tpu.pipeline_mode<synchronous>, transform_indices = @transform_1, window_bounds = array<i64: 32, 16>}, {pipeline_mode = #tpu.pipeline_mode<synchronous>, transform_indices = @transform_2, window_bounds = array<i64: 16, 32>}, {pipeline_mode = #tpu.pipeline_mode<synchronous>, transform_indices = @transform_3, window_bounds = array<i64: 32, 1>}, {transform_indices = @transform_4, window_bounds = array<i64: 1, 16, 64>}, {transform_indices = @transform_5, window_bounds = array<i64: 1, 1, 8, 128>}]} {
    %c0 = arith.constant 0 : index
    %c0_0 = arith.constant 0 : index
    %c0_1 = arith.constant 0 : index
    %0 = vector.load %arg2[%c0, %c0_0, %c0_1] : memref<1x16x64xf32, #tpu.memory_space<vmem>>, vector<1x16x64xf32>
    %1 = vector.shape_cast %0 : vector<1x16x64xf32> to vector<16x64xf32>
    %c0_2 = arith.constant 0 : index
    %c0_3 = arith.constant 0 : index
    %2 = vector.load %arg3[%c0_2, %c0_3] : memref<32x16xf32, #tpu.memory_space<vmem>>, vector<32x16xf32>
    %c0_4 = arith.constant 0 : index
    %c0_5 = arith.constant 0 : index
    %3 = vector.load %arg4[%c0_4, %c0_5] : memref<16x32xf32, #tpu.memory_space<vmem>>, vector<16x32xf32>
    %c0_6 = arith.constant 0 : index
    %c0_7 = arith.constant 0 : index
    %4 = vector.load %arg5[%c0_6, %c0_7] : memref<32x1xf32, #tpu.memory_space<vmem>>, vector<32x1xf32>
    %cst = arith.constant dense<0.000000e+00> : vector<32x64xf32>
    %5 = tpu.matmul %2, %1, %cst {dimension_numbers = #tpu.dot_dimension_numbers<[1], [0], [0], [1], [0, 0, 1, 1], [], []>} : vector<32x16xf32>, vector<16x64xf32>, vector<32x64xf32> -> vector<32x64xf32>
    %6 = vector.broadcast %4 : vector<32x1xf32> to vector<32x64xf32>
    %7 = arith.addf %5, %6 : vector<32x64xf32>
    %cst_8 = arith.constant dense<0x7F800000> : vector<64xf32>
    %8 = vector.multi_reduction <minimumf>, %7, %cst_8 [0] : vector<32x64xf32> to vector<64xf32>
    %9 = vector.shape_cast %8 : vector<64xf32> to vector<1x64xf32>
    %10 = tpu.iota {dimensions = array<i32: 0>} : vector<32x64xi32>
    %11 = arith.sitofp %10 : vector<32x64xi32> to vector<32x64xf32>
    %12 = vector.broadcast %9 : vector<1x64xf32> to vector<32x64xf32>
    %13 = arith.cmpf oeq, %7, %12 : vector<32x64xf32>
    %cst_9 = arith.constant 3.200000e+01 : f32
    %14 = vector.broadcast %cst_9 : f32 to vector<32x64xf32>
    %15 = arith.select %13, %11, %14 : vector<32x64xi1>, vector<32x64xf32>
    %cst_10 = arith.constant dense<0x7F800000> : vector<64xf32>
    %16 = vector.multi_reduction <minimumf>, %15, %cst_10 [0] : vector<32x64xf32> to vector<64xf32>
    %17 = vector.shape_cast %16 : vector<64xf32> to vector<1x64xf32>
    %18 = vector.broadcast %17 : vector<1x64xf32> to vector<32x64xf32>
    %19 = arith.cmpf oeq, %11, %18 : vector<32x64xf32>
    %20 = arith.extui %19 : vector<32x64xi1> to vector<32x64xi32>
    %21 = arith.sitofp %20 : vector<32x64xi32> to vector<32x64xf32>
    %cst_11 = arith.constant dense<0.000000e+00> : vector<16x64xf32>
    %22 = tpu.matmul %3, %21, %cst_11 {dimension_numbers = #tpu.dot_dimension_numbers<[1], [0], [0], [1], [0, 0, 1, 1], [], []>} : vector<16x32xf32>, vector<32x64xf32>, vector<16x64xf32> -> vector<16x64xf32>
    %c0_12 = arith.constant 0 : index
    %c0_13 = arith.constant 0 : index
    %c0_14 = arith.constant 0 : index
    %23 = vector.load %arg6[%c0_12, %c0_13, %c0_14] : memref<1x16x64xf32, #tpu.memory_space<vmem>>, vector<1x16x64xf32>
    %24 = vector.shape_cast %23 : vector<1x16x64xf32> to vector<16x64xf32>
    %25 = vector.shape_cast %22 : vector<16x64xf32> to vector<1x16x64xf32>
    tpu.vector_store %arg6[%c0_12, %c0_13, %c0_14], %25 {strides = array<i32>} : memref<1x16x64xf32, #tpu.memory_space<vmem>>, vector<1x16x64xf32>,
    %26 = arith.subf %22, %1 : vector<16x64xf32>
    %27 = arith.mulf %26, %26 : vector<16x64xf32>
    %28 = vector.shape_cast %27 : vector<16x64xf32> to vector<1x16x64xf32>
    %cst_15 = arith.constant dense<0.000000e+00> : vector<1xf32>
    %29 = vector.multi_reduction <add>, %28, %cst_15 [1, 2] : vector<1x16x64xf32> to vector<1xf32>
    %30 = vector.shape_cast %29 : vector<1xf32> to vector<1x1x1xf32>
    %31 = vector.extract %30[0, 0, 0] : f32 from vector<1x1x1xf32>
    %cst_16 = arith.constant 0.000000e+00 : f32
    %32 = vector.broadcast %cst_16 : f32 to vector<8x128xf32>
    %33 = vector.broadcast %31 : f32 to vector<8x128xf32>
    %34 = arith.addf %33, %32 : vector<8x128xf32>
    %c0_17 = arith.constant 0 : index
    %c0_18 = arith.constant 0 : index
    %c0_19 = arith.constant 0 : index
    %c0_20 = arith.constant 0 : index
    %35 = vector.load %arg7[%c0_17, %c0_18, %c0_19, %c0_20] : memref<1x1x8x128xf32, #tpu.memory_space<vmem>>, vector<1x1x8x128xf32>
    %36 = vector.shape_cast %35 : vector<1x1x8x128xf32> to vector<8x128xf32>
    %37 = vector.shape_cast %34 : vector<8x128xf32> to vector<1x1x8x128xf32>
    tpu.vector_store %arg7[%c0_17, %c0_18, %c0_19, %c0_20], %37 {strides = array<i32>} : memref<1x1x8x128xf32, #tpu.memory_space<vmem>>, vector<1x1x8x128xf32>,
    return
  }
  func.func @transform_0(%arg0: i32, %arg1: i32) -> (i32, i32, i32) {
    %c0_i32 = arith.constant 0 : i32
    %c0_i32_0 = arith.constant 0 : i32
    return %arg0, %c0_i32, %arg1 : i32, i32, i32
  }
  func.func @transform_1(%arg0: i32, %arg1: i32) -> (i32, i32) {
    %c0_i32 = arith.constant 0 : i32
    %c0_i32_0 = arith.constant 0 : i32
    %c0_i32_1 = arith.constant 0 : i32
    return %c0_i32, %c0_i32_0 : i32, i32
  }
  func.func @transform_2(%arg0: i32, %arg1: i32) -> (i32, i32) {
    %c0_i32 = arith.constant 0 : i32
    %c0_i32_0 = arith.constant 0 : i32
    %c0_i32_1 = arith.constant 0 : i32
    return %c0_i32, %c0_i32_0 : i32, i32
  }
  func.func @transform_3(%arg0: i32, %arg1: i32) -> (i32, i32) {
    %c0_i32 = arith.constant 0 : i32
    %c0_i32_0 = arith.constant 0 : i32
    %c0_i32_1 = arith.constant 0 : i32
    return %c0_i32, %c0_i32_0 : i32, i32
  }
  func.func @transform_4(%arg0: i32, %arg1: i32) -> (i32, i32, i32) {
    %c0_i32 = arith.constant 0 : i32
    %c0_i32_0 = arith.constant 0 : i32
    return %arg0, %c0_i32, %arg1 : i32, i32, i32
  }
  func.func @transform_5(%arg0: i32, %arg1: i32) -> (i32, i32, i32, i32) {
    %c0_i32 = arith.constant 0 : i32
    %c0_i32_0 = arith.constant 0 : i32
    %c0_i32_1 = arith.constant 0 : i32
    return %arg0, %arg1, %c0_i32, %c0_i32_0 : i32, i32, i32, i32
  }
}

</mosaic_0001>

<bundles_post_ra>
// kernel: vector_quantize.1
= control target key start
LH: loop header
LB: loop body
LE: loop exit
PB: predicated region body
PF: predicated region fallthrough
CT: control target
= control target key end

     0   :  { %s847_s18 = smov 0   ;;  %s849_s19 = smov 0   ;;  %s947_s0 = inlined_call_operand.vmem [shape: f32[2,16,64], index: 0, kind: input, shape index: {}]   ;;  %s948_s1 = inlined_call_operand.vmem [shape: f32[32,16], index: 1, kind: input, shape index: {}]   ;;  %s949_s2 = inlined_call_operand.vmem [shape: f32[16,32], index: 2, kind: input, shape index: {}]   ;;  %s950_s3 = inlined_call_operand.vmem [shape: f32[32,1], index: 3, kind: input, shape index: {}]   ;;  %s951_s4 = inlined_call_operand.vmem [shape: f32[2,16,64], index: 4, kind: output, shape index: {0}]   ;;  %s952_s5 = inlined_call_operand.vmem [shape: f32[2,1,8,128], index: 5, kind: output, shape index: {1}]  }
   0x1   :  { %s851_s20 = smov 0  }
   0x2 LB: > { %s28_s21 = sadd.s32 1, %s809_s19  ;;  %p692_p0 = scmp.ge.s32.totalorder %s813_s20, 1  ;;  %s813_s20 = sphi %s851_s20, %s16_s20   ;;  %s809_s19 = sphi %s849_s19, %s954_s19   ;;  %s805_s18 = sphi %s847_s18, %s953_s18  }
   0x3   : > { %p30_p1 = scmp.ge.s32.totalorder %s28_s21, 2  ;;  %p211_p2 = scmp.lt.s32.totalorder %s813_s20, 3 }
   0x5   : > { %s956_s21 = smov (%p30_p1, %s28_s21), 0  ;;  %p212_p3 = pnand %p692_p0, %p211_p2 }
   0x6   : > { %p252_p4 = scmp.lt.s32.totalorder (!%p212_p3), %s805_s18, 1  ;;  %v277_v0 = vld [vmem:[%s948_s1] sm:$0xff] (!%p212_p3)  ;;  %vm307_vm0 = vcmask (!%p212_p3), 130048   ;;  %v815_v1 = vmov (!%p212_p3), 0   ;;  %v285_v3 = vld [vmem:[%s950_s3 + $0x10] sm:$0xff] (!%p212_p3)  ;;  %v284_v4 = vld [vmem:[%s950_s3 + $0x8] sm:$0xff] (!%p212_p3)  ;;  %v419_v31 = vlaneseq (!%p212_p3) }
   0x7   : > { %215 = sbr.rel (%p212_p3) target bundleno = 715 (0x2cb), region = 36  ;;  %732 = vmatprep.mubr.msk.f32.mxu0 (!%p212_p3), %vm307_vm0, %v277_v0  ;;  %789 = vset.pattern.permute.xlu0 (!%p212_p3), %v815_v1  ;;  %v283_v2 = vld [vmem:[%s950_s3] sm:$0xff] (!%p212_p3)  ;;  %v286_v5 = vld [vmem:[%s950_s3 + $0x18] sm:$0xff] (!%p212_p3)  ;;  %v278_v9 = vld [vmem:[%s948_s1 + $0x8] sm:$0xff] (!%p212_p3)  ;;  %vm461_vm1 = vcmask (!%p212_p3), 261120   ;;  %vm405_vm2 = vcmask (!%p212_p3), 523264  }
   0x8   : > { %790 = vset.pattern.permute.xlu1 (!%p212_p3), %v815_v1  ;;  %289 = vperm.xlu0 (!%p212_p3), %789, %v283_v2   ;;  %v279_v10 = vld [vmem:[%s948_s1 + $0x10] sm:$0xff] (!%p212_p3)  ;;  %v280_v11 = vld [vmem:[%s948_s1 + $0x18] sm:$0xff] (!%p212_p3)  ;;  %v281_v12 = vld [vmem:[%s949_s2] sm:$0xff] (!%p212_p3)  ;;  %v420_v34 = vshrl.u32 (!%p212_p3), %v419_v31, 7  ;;  %v816_v0 = vmov (!%p212_p3), 1.0|1.0  }
   0x9   : > { %299 = vperm.xlu1 (!%p212_p3), %790, %v285_v3   ;;  %746 = vmatprep.mubr.msk.f32.mxu1 (!%p212_p3), %vm461_vm1, %v281_v12  ;;  %v282_v1 = vld [vmem:[%s949_s2 + $0x8] sm:$0xff] (!%p212_p3) }
   0xa   : > { %v422_v37 = vadd.s32 (!%p212_p3), 16, %v420_v34  ;;  %v423_v38 = vadd.s32 (!%p212_p3), 24, %v420_v34  ;;  %v421_v39 = vadd.s32 (!%p212_p3), 8, %v420_v34  ;;  %v424_v44 = vcvt.s32.f32 (!%p212_p3), %v420_v34 }
   0xc   : > { %294 = vperm.xlu0 (!%p212_p3), %789, %v284_v4   ;;  %v426_v42 = vcvt.s32.f32 (!%p212_p3), %v422_v37  ;;  %v427_v43 = vcvt.s32.f32 (!%p212_p3), %v423_v38  ;;  %v425_v45 = vcvt.s32.f32 (!%p212_p3), %v421_v39 }
   0xd   : > { %304 = vperm.xlu1 (!%p212_p3), %790, %v286_v5  }
   0xe   : > { %s958_s18 = smov (!%p252_p4, %s805_s18), 1 }
   0xf   : > { %s714_s30 = sshll.u32 %s958_s18, 4  ;;  %s697_s28 = sshll.u32 %s958_s18, 3 }
  0x10   : > { %s259_s10 = scalar_lea.vmem %s947_s0, %s714_s30  ;;  %s267_s27 = scalar_lea.vmem %s951_s4, %s714_s30 }
  0x11   : > { %v889_v6 = vld [vmem:[%s259_s10] sm:$0xff]  ;;  %v891_v7 = vld [vmem:[%s259_s10 + $0x8] sm:$0xff]  ;;  %s274_s6 = scalar_lea.vmem %s952_s5, %s697_s28 }
  0x12   : > { %v749_v8 = vpack.c.bf16 %v891_v7, %v889_v6 }
  0x14   : > { %750 = vmatprep.subr.bf16.mxu0 %v749_v8 }
  0x15   : > { %752 = vmatpush3.bf16.msra.mxu0 %v749_v8 }
  0x18   : > { %733 = vmatmul.mubr.msk.f32.vlgmr.msra.gmra.mrb[0].mxu0 %vm307_vm0, %v278_v9 }
  0x19   : > { %735 = vmatprep.mubr.msk.f32.mxu0 %vm307_vm0, %v279_v10 }
  0x1c   : > { %736 = vmatmul.mubr.msk.f32.gmra.mrb[2].mxu0 %vm307_vm0, %v280_v11 }
  0x87   : > { %v290_v13 = vpop.permute.xlu0 %289 }
  0x88   : > { %v300_v14 = vpop.permute.xlu1 %299 }
  0x8b   : > { %v295_v15 = vpop.permute.xlu0 %294 }
  0x8c   : > { %v305_v21 = vpop.permute.xlu1 %304 }
  0xeb   : > { %v734_v16 = vpop.f32.mrb[0].mxu0 }
  0xec   : > { %v392_v17 = vadd.f32 %v734_v16, %v295_v15  ;;  %v386_v18 = vpop.f32.mrb[1].mxu0 }
  0xed   : > { %v387_v19 = vadd.f32 %v386_v18, %v290_v13 }
  0xee   : > { %v407_v20 = vsel %vm405_vm2, %v392_v17, inf }
  0xef   : > { %v406_v22 = vsel %vm405_vm2, %v387_v19, inf  ;;  %v737_v23 = vpop.f32.mrb[2].mxu0 }
  0xf0   : > { %v410_v24 = vmin.f32 %v406_v22, %v407_v20  ;;  %v402_v25 = vadd.f32 %v737_v23, %v305_v21  ;;  %v396_v26 = vpop.f32.mrb[3].mxu0 }
  0xf1   : > { %v397_v27 = vadd.f32 %v396_v26, %v300_v14 }
  0xf2   : > { %v409_v28 = vsel %vm405_vm2, %v402_v25, inf }
  0xf3   : > { %v408_v29 = vsel %vm405_vm2, %v397_v27, inf }
  0xf4   : > { %v411_v30 = vmin.f32 %v408_v29, %v409_v28 }
  0xf6   : > { %v412_v32 = vmin.f32 %v410_v24, %v411_v30 }
  0xf8   : > { %v413_v33 = vrot.slane %v412_v32, 4 }
  0xfa   : > { %v414_v35 = vmin.f32 %v412_v32, %v413_v33 }
  0xfc   : > { %v415_v36 = vrot.slane %v414_v35, 2 }
  0xfe   : > { %v416_v40 = vmin.f32 %v414_v35, %v415_v36 }
 0x100   : > { %v417_v41 = vrot.slane %v416_v40, 1 }
 0x102   : > { %v418_v46 = vmin.f32 %v416_v40, %v417_v41 }
 0x104   : > { %vm430_vm3 = vcmp.eq.f32.partialorder %v397_v27, %v418_v46  ;;  %vm431_vm4 = vcmp.eq.f32.partialorder %v402_v25, %v418_v46  ;;  %vm428_vm5 = vcmp.eq.f32.partialorder %v387_v19, %v418_v46  ;;  %vm429_vm6 = vcmp.eq.f32.partialorder %v392_v17, %v418_v46 }
 0x105   : > { %v434_v47 = vsel %vm430_vm3, %v426_v42, 32.0  ;;  %v435_v48 = vsel %vm431_vm4, %v427_v43, 32.0  ;;  %v432_v49 = vsel %vm428_vm5, %v424_v44, 32.0  ;;  %v433_v50 = vsel %vm429_vm6, %v425_v45, 32.0 }
 0x106   : > { %v438_v51 = vsel %vm405_vm2, %v434_v47, inf  ;;  %v439_v52 = vsel %vm405_vm2, %v435_v48, inf  ;;  %v436_v53 = vsel %vm405_vm2, %v432_v49, inf  ;;  %v437_v54 = vsel %vm405_vm2, %v433_v50, inf }
 0x107   : > { %v441_v55 = vmin.f32 %v438_v51, %v439_v52  ;;  %v440_v56 = vmin.f32 %v436_v53, %v437_v54 }
 0x109   : > { %v442_v57 = vmin.f32 %v440_v56, %v441_v55 }
 0x10b   : > { %v443_v58 = vrot.slane %v442_v57, 4 }
 0x10d   : > { %v444_v59 = vmin.f32 %v442_v57, %v443_v58 }
 0x10f   : > { %v445_v60 = vrot.slane %v444_v59, 2 }
 0x111   : > { %v446_v61 = vmin.f32 %v444_v59, %v445_v60 }
 0x113   : > { %v447_v62 = vrot.slane %v446_v61, 1 }
 0x115   : > { %v448_v63 = vmin.f32 %v446_v61, %v447_v62 }
 0x117   : > { %vm449_vm7 = vcmp.eq.f32.partialorder %v424_v44, %v448_v63  ;;  %vm450_vm8 = vcmp.eq.f32.partialorder %v425_v45, %v448_v63  ;;  %vm451_vm9 = vcmp.eq.f32.partialorder %v426_v42, %v448_v63  ;;  %vm452_vm10 = vcmp.eq.f32.partialorder %v427_v43, %v448_v63 }
 0x118   : > { %vm753_vm11 = vmpackc.low %vm450_vm8, %vm449_vm7 }
 0x119   : > { %754 = vmatprep.subr.msk.bf16.mxu1 %vm753_vm11, %v816_v0  ;;  %vm757_vm12 = vmpackc.low %vm452_vm10, %vm451_vm9 }
 0x11a   : > { %756 = vmatpush3.bf16.msk.msra.mxu1 %vm753_vm11, %v816_v0 }
 0x11b   : > { %758 = vmatprep.subr.msk.bf16.mxu1 %vm757_vm12, %v816_v0 }
 0x11e   : > { %760 = vmatpush3.bf16.msk.msra.mxu1 %vm757_vm12, %v816_v0 }
 0x121   : > { %747 = vmatmul.mubr.msk.f32.vlgmr.msra.gmra.mrb[0].mxu1 %vm461_vm1, %v282_v1 }
 0x1f4   : > { %v748_v2 = vpop.f32.mrb[0].mxu1 }
 0x1f5   : > { %544 = vst.msk [vmem:[%s267_s27 + $0x8] sm:$0xff] %vm405_vm2, %v748_v2  ;;  %v546_v3 = vsub.f32 %v748_v2, %v891_v7  ;;  %v534_v4 = vpop.f32.mrb[1].mxu1 }
 0x1f6   : > { %543 = vst.msk [vmem:[%s267_s27] sm:$0xff] %vm405_vm2, %v534_v4  ;;  %v545_v5 = vsub.f32 %v534_v4, %v889_v6 }
 0x1f7   : > { %v548_v8 = vmul.f32 %v546_v3, %v546_v3 }
 0x1f8   : > { %v547_v9 = vmul.f32 %v545_v5, %v545_v5 }
 0x1f9   : > { %v550_v10 = vsel %vm405_vm2, %v548_v8, 0.0 }
 0x1fa   : > { %v549_v11 = vsel %vm405_vm2, %v547_v9, 0.0 }
 0x1fb   : > { %v551_v12 = vadd.f32 %v550_v10, %v549_v11 }
 0x1fd   : > { %552 = vadd.xlane.f32.xlu0 %v551_v12 }
 0x28a   : > { %v553_v13 = vpop.xlane.xlu0 %552 }
 0x28b   : > { %v554_v14 = vrot.slane %v553_v13, 4 }
 0x28d   : > { %v555_v15 = vadd.f32 %v554_v14, %v553_v13 }
 0x28f   : > { %v556_v16 = vrot.slane %v555_v15, 2 }
 0x291   : > { %v557_v17 = vadd.f32 %v556_v16, %v555_v15 }
 0x293   : > { %v558_v7 = vrot.slane %v557_v17, 1 }
 0x295   : > { %v559_v18 = vadd.f32 %v558_v7, %v557_v17 }
 0x297   : > { %761 = vpush %v559_v18 }
 0x2c8   : > { %s762_s7 = spop %761 }
 0x2c9   : > { %v561_v6 = vstv %s762_s7 }
 0x2ca   : > { %563 = vst [vmem:[%s274_s6] sm:$0xff] %v561_v6 }
 0x2cb PF: > { %s16_s20 = sadd.s32 1, %s813_s20   ;;  %s953_s18 = smov %s809_s19 }
 0x2cc   : > { %p13_p5 = scmp.ge.s32.totalorder %s16_s20, 4   ;;  %s954_s19 = smov %s956_s21 }
 0x2ce   :  { %15 = sbr.rel (!%p13_p5) target bundleno = 2 (0x2), region = 78 }

</bundles_post_ra>
